<compile_context>
chip_gen: v6e
topology: v6e:2x2x1
jax: 0.10.0
libtpu: 0.0.40
codegen_flags: <defaults>
</compile_context>

<pallas_src>
import jax
import jax.numpy as jnp
from jax import lax
from jax.experimental import pallas as pl
from jax.experimental.pallas import tpu as pltpu


INV_T = 1.0 / 0.2  # temperature T = 0.2
_EPS = 1e-12       # guard for zero-norm rows (parity-safe for nonzero rows)


# ------------------- fused encoder(x) + encoder(x_aug) + loss -------------------
def simclr_fused_kernel(x_ref, xa_ref, w1_ref, b1_ref, w2_ref, b2_ref,
                        z_ref, loss_ref, xcat_ref):
    B = x_ref.shape[0]

    # Stack the two views in VMEM (no host-side concatenate / HBM round trip);
    # one MXU chain then encodes both views at once (doubles the M dim).
    xcat_ref[0:B, :] = x_ref[...]
    xcat_ref[B:2 * B, :] = xa_ref[...]
    xcat = xcat_ref[...]

    # Stand-in encoder: bf16 MXU operands, f32 accumulation.
    h = jnp.dot(xcat.astype(jnp.bfloat16), w1_ref[...],
                preferred_element_type=jnp.float32) + b1_ref[...]        # [2B, 128]
    h = jnp.maximum(h, 0.0)
    z = jnp.dot(h.astype(jnp.bfloat16), w2_ref[...],
                preferred_element_type=jnp.float32) + b2_ref[...]        # [2B, 128]
    # Lane-dense (2B, 128) store; padded embedding columns are exactly zero.
    z_ref[...] = z.astype(z_ref.dtype)

    # SimCLR loss on the two halves, embeddings kept in VMEM (all f32 VPU/EUP).
    za = z[:B, :]
    zb = z[B:, :]
    za_n = za * lax.rsqrt(jnp.maximum(jnp.sum(za * za, axis=1, keepdims=True), _EPS))
    zb_n = zb * lax.rsqrt(jnp.maximum(jnp.sum(zb * zb, axis=1, keepdims=True), _EPS))

    # cosine-sim matrix: contraction expressed directly (ik,jk->ij), no .T
    sim = lax.dot_general(za_n, zb_n, (((1,), (1,)), ((), ())),
                          preferred_element_type=jnp.float32)            # [B, B]
    # diagonal (positive pair) computed directly as a row-wise dot
    diag = jnp.sum(za_n * zb_n, axis=1, keepdims=True)                   # [B, 1]

    exp_sim = jnp.exp(sim * INV_T)                                       # [B, B]
    row_sum = jnp.sum(exp_sim, axis=1, keepdims=True)                    # [B, 1]
    pos = jnp.exp(diag * INV_T)                                          # [B, 1]

    # -mean(log(pos / (row_sum - pos))) == mean(log(row_sum - pos) - diag/T)
    loss_ref[0, 0] = jnp.mean(jnp.log(row_sum - pos) - diag * INV_T)


def simclr_forward_and_loss(x, x_aug, w1p, b1p, w2p, b2p, emb_dim):
    """Single pallas_call: encoder on both views + NT-Xent loss."""
    B, F = x.shape
    PAD = w1p.shape[1]
    vmem = pl.BlockSpec(memory_space=pltpu.MemorySpace.VMEM)
    smem = pl.BlockSpec(memory_space=pltpu.MemorySpace.SMEM)
    z_both, loss = pl.pallas_call(
        simclr_fused_kernel,
        out_shape=(jax.ShapeDtypeStruct((2 * B, PAD), jnp.float32),
                   jax.ShapeDtypeStruct((1, 1), jnp.float32)),
        in_specs=[vmem, vmem, vmem, vmem, vmem, vmem],
        out_specs=(vmem, smem),
        scratch_shapes=[pltpu.VMEM((2 * B, F), jnp.float32)],
        compiler_params=pltpu.CompilerParams(vmem_limit_bytes=32 * 1024 * 1024),
    )(x, x_aug, w1p, b1p, w2p, b2p)
    return z_both[:B, :emb_dim], z_both[B:, :emb_dim], loss[0, 0]


# ------------------- standalone loss (staticmethod parity) -------------------
def simclr_loss_kernel(x_ref, xa_ref, loss_ref):
    x = x_ref[...].astype(jnp.float32)
    xa = xa_ref[...].astype(jnp.float32)
    x_n = x * lax.rsqrt(jnp.maximum(jnp.sum(x * x, axis=1, keepdims=True), _EPS))
    xa_n = xa * lax.rsqrt(jnp.maximum(jnp.sum(xa * xa, axis=1, keepdims=True), _EPS))
    sim = lax.dot_general(x_n, xa_n, (((1,), (1,)), ((), ())),
                          preferred_element_type=jnp.float32)
    diag = jnp.sum(x_n * xa_n, axis=1, keepdims=True)
    exp_sim = jnp.exp(sim * INV_T)
    row_sum = jnp.sum(exp_sim, axis=1, keepdims=True)
    loss_ref[0, 0] = jnp.mean(jnp.log(row_sum - jnp.exp(diag * INV_T)) - diag * INV_T)


def simclr_loss(x, x_aug):
    vmem = pl.BlockSpec(memory_space=pltpu.MemorySpace.VMEM)
    smem = pl.BlockSpec(memory_space=pltpu.MemorySpace.SMEM)
    out = pl.pallas_call(
        simclr_loss_kernel,
        out_shape=jax.ShapeDtypeStruct((1, 1), jnp.float32),
        in_specs=[vmem, vmem],
        out_specs=smem,
    )(x, x_aug)
    return out[0, 0]


# ------------------------------- references --------------------------------
def encoder_ref(x, w1p, b1p, w2p, b2p):
    # Mirrors the in-kernel bf16-MXU / f32-accumulate numerics exactly.
    h = jnp.dot(x.astype(jnp.bfloat16), w1p, preferred_element_type=jnp.float32) + b1p
    h = jnp.maximum(h, 0.0)
    return jnp.dot(h.astype(jnp.bfloat16), w2p, preferred_element_type=jnp.float32) + b2p


def simclr_loss_ref(x, x_aug):
    # Literal transcription of the PyTorch staticmethod (f32).
    T = 0.2
    x_abs = jnp.linalg.norm(x, axis=1)
    xa_abs = jnp.linalg.norm(x_aug, axis=1)
    sim = jnp.einsum('ik,jk->ij', x, x_aug) / jnp.einsum('i,j->ij', x_abs, xa_abs)
    sim = jnp.exp(sim / T)
    pos = jnp.diagonal(sim)
    loss = pos / (jnp.sum(sim, axis=1) - pos)
    return -jnp.mean(jnp.log(loss))


# ---------------------------------- main ------------------------------------
if __name__ == "__main__":
    batch = 8          # number of complexes in the batch
    num_feat = 32      # dataset.num_features_in_dim(0)
    emb_dim = 16       # args.emb_dim
    PAD = 128          # lane-dense padded width for hidden / embedding dims

    key = jax.random.PRNGKey(0)
    k_x, k_xa, k_w1, k_b1, k_w2, k_b2 = jax.random.split(key, 6)

    # two "views" of the batch (original / perturbed encoder input)
    x_in = jax.random.normal(k_x, (batch, num_feat), dtype=jnp.float32)
    x_aug_in = x_in + 0.1 * jax.random.normal(k_xa, (batch, num_feat), dtype=jnp.float32)

    # deterministic stand-in encoder parameters (logical shapes)
    w1 = jax.random.normal(k_w1, (num_feat, emb_dim), dtype=jnp.float32) * 0.1
    b1 = jax.random.normal(k_b1, (1, emb_dim), dtype=jnp.float32) * 0.01
    w2 = jax.random.normal(k_w2, (emb_dim, emb_dim), dtype=jnp.float32) * 0.1
    b2 = jax.random.normal(k_b2, (1, emb_dim), dtype=jnp.float32) * 0.01

    # One-off (init-time) lane-dense padding of the parameters; weights are
    # stored in bf16 (MXU operands), biases stay f32 (added to f32 accumulator).
    w1p = jnp.pad(w1, ((0, 0), (0, PAD - emb_dim))).astype(jnp.bfloat16)
    b1p = jnp.pad(b1, ((0, 0), (0, PAD - emb_dim)))
    w2p = jnp.pad(w2, ((0, PAD - emb_dim), (0, PAD - emb_dim))).astype(jnp.bfloat16)
    b2p = jnp.pad(b2, ((0, 0), (0, PAD - emb_dim)))

    # fused forward + loss (single Pallas kernel launch, no host-side concat)
    z, z_aug, loss = simclr_forward_and_loss(x_in, x_aug_in, w1p, b1p, w2p, b2p, emb_dim)
    loss = jax.block_until_ready(loss)

    # standalone loss kernel (staticmethod-style API) on the Pallas embeddings
    loss2 = jax.block_until_ready(simclr_loss(z, z_aug))

    # correctness checks
    z_ref = encoder_ref(x_in, w1p, b1p, w2p, b2p)[:, :emb_dim]
    z_aug_ref = encoder_ref(x_aug_in, w1p, b1p, w2p, b2p)[:, :emb_dim]
    loss_ref = simclr_loss_ref(z, z_aug)   # PyTorch-formula loss on the kernel embeddings

    assert jnp.allclose(z, z_ref, atol=1e-3, rtol=1e-3)
    assert jnp.allclose(z_aug, z_aug_ref, atol=1e-3, rtol=1e-3)
    assert jnp.allclose(loss, loss_ref, atol=1e-4, rtol=1e-4)
    assert jnp.allclose(loss2, loss_ref, atol=1e-4, rtol=1e-4)

    print("KERNEL_OK")
</pallas_src>

<mosaic_0001>
module attributes {stable_mosaic.version = 11 : i64} {
  func.func @simclr_fused_kernel(%arg0: memref<8x32xf32, #tpu.memory_space<vmem>>, %arg1: memref<8x32xf32, #tpu.memory_space<vmem>>, %arg2: memref<32x128xbf16, #tpu.memory_space<vmem>>, %arg3: memref<1x128xf32, #tpu.memory_space<vmem>>, %arg4: memref<128x128xbf16, #tpu.memory_space<vmem>>, %arg5: memref<1x128xf32, #tpu.memory_space<vmem>>, %arg6: memref<16x128xf32, #tpu.memory_space<vmem>>, %arg7: memref<1x1xf32, #tpu.memory_space<smem>>, %arg8: memref<16x32xf32, #tpu.memory_space<vmem>>) attributes {dimension_semantics = [], scalar_prefetch = 0 : i64, scratch_operands = 1 : i64, tpu.core_type = #tpu.core_type<tc>} {
    %c0 = arith.constant 0 : index
    %c0_0 = arith.constant 0 : index
    %0 = vector.load %arg0[%c0, %c0_0] : memref<8x32xf32, #tpu.memory_space<vmem>>, vector<8x32xf32>
    %c0_1 = arith.constant 0 : index
    %c0_2 = arith.constant 0 : index
    %1 = vector.load %arg8[%c0_1, %c0_2] : memref<16x32xf32, #tpu.memory_space<vmem>>, vector<8x32xf32>
    tpu.vector_store %arg8[%c0_1, %c0_2], %0 {strides = array<i32>} : memref<16x32xf32, #tpu.memory_space<vmem>>, vector<8x32xf32>,
    %c0_3 = arith.constant 0 : index
    %c0_4 = arith.constant 0 : index
    %2 = vector.load %arg1[%c0_3, %c0_4] : memref<8x32xf32, #tpu.memory_space<vmem>>, vector<8x32xf32>
    %c8 = arith.constant 8 : index
    %c0_5 = arith.constant 0 : index
    %3 = vector.load %arg8[%c8, %c0_5] : memref<16x32xf32, #tpu.memory_space<vmem>>, vector<8x32xf32>
    tpu.vector_store %arg8[%c8, %c0_5], %2 {strides = array<i32>} : memref<16x32xf32, #tpu.memory_space<vmem>>, vector<8x32xf32>,
    %c0_6 = arith.constant 0 : index
    %c0_7 = arith.constant 0 : index
    %4 = vector.load %arg8[%c0_6, %c0_7] : memref<16x32xf32, #tpu.memory_space<vmem>>, vector<16x32xf32>
    %5 = arith.truncf %4 : vector<16x32xf32> to vector<16x32xbf16>
    %c0_8 = arith.constant 0 : index
    %c0_9 = arith.constant 0 : index
    %6 = vector.load %arg2[%c0_8, %c0_9] : memref<32x128xbf16, #tpu.memory_space<vmem>>, vector<32x128xbf16>
    %cst = arith.constant dense<0.000000e+00> : vector<16x128xf32>
    %7 = tpu.matmul %5, %6, %cst {dimension_numbers = #tpu.dot_dimension_numbers<[1], [0], [0], [1], [0, 0, 1, 1], [], []>} : vector<16x32xbf16>, vector<32x128xbf16>, vector<16x128xf32> -> vector<16x128xf32>
    %c0_10 = arith.constant 0 : index
    %c0_11 = arith.constant 0 : index
    %8 = vector.load %arg3[%c0_10, %c0_11] : memref<1x128xf32, #tpu.memory_space<vmem>>, vector<1x128xf32>
    %9 = vector.broadcast %8 : vector<1x128xf32> to vector<16x128xf32>
    %10 = arith.addf %7, %9 : vector<16x128xf32>
    %cst_12 = arith.constant 0.000000e+00 : f32
    %11 = vector.broadcast %cst_12 : f32 to vector<16x128xf32>
    %12 = arith.maximumf %10, %11 : vector<16x128xf32>
    %13 = arith.truncf %12 : vector<16x128xf32> to vector<16x128xbf16>
    %c0_13 = arith.constant 0 : index
    %c0_14 = arith.constant 0 : index
    %14 = vector.load %arg4[%c0_13, %c0_14] : memref<128x128xbf16, #tpu.memory_space<vmem>>, vector<128x128xbf16>
    %cst_15 = arith.constant dense<0.000000e+00> : vector<16x128xf32>
    %15 = tpu.matmul %13, %14, %cst_15 {dimension_numbers = #tpu.dot_dimension_numbers<[1], [0], [0], [1], [0, 0, 1, 1], [], []>} : vector<16x128xbf16>, vector<128x128xbf16>, vector<16x128xf32> -> vector<16x128xf32>
    %c0_16 = arith.constant 0 : index
    %c0_17 = arith.constant 0 : index
    %16 = vector.load %arg5[%c0_16, %c0_17] : memref<1x128xf32, #tpu.memory_space<vmem>>, vector<1x128xf32>
    %17 = vector.broadcast %16 : vector<1x128xf32> to vector<16x128xf32>
    %18 = arith.addf %15, %17 : vector<16x128xf32>
    %c0_18 = arith.constant 0 : index
    %c0_19 = arith.constant 0 : index
    %19 = vector.load %arg6[%c0_18, %c0_19] : memref<16x128xf32, #tpu.memory_space<vmem>>, vector<16x128xf32>
    tpu.vector_store %arg6[%c0_18, %c0_19], %18 {strides = array<i32>} : memref<16x128xf32, #tpu.memory_space<vmem>>, vector<16x128xf32>,
    %20 = vector.extract_strided_slice %18 {offsets = [0, 0], sizes = [8, 128], strides = [1, 1]} : vector<16x128xf32> to vector<8x128xf32>
    %21 = vector.extract_strided_slice %18 {offsets = [8, 0], sizes = [8, 128], strides = [1, 1]} : vector<16x128xf32> to vector<8x128xf32>
    %22 = arith.mulf %20, %20 : vector<8x128xf32>
    %cst_20 = arith.constant dense<0.000000e+00> : vector<8xf32>
    %23 = vector.multi_reduction <add>, %22, %cst_20 [1] : vector<8x128xf32> to vector<8xf32>
    %24 = vector.shape_cast %23 : vector<8xf32> to vector<8x1xf32>
    %cst_21 = arith.constant 9.99999996E-13 : f32
    %25 = vector.broadcast %cst_21 : f32 to vector<8x1xf32>
    %26 = arith.maximumf %24, %25 : vector<8x1xf32>
    %27 = math.rsqrt %26 : vector<8x1xf32>
    %28 = vector.broadcast %27 : vector<8x1xf32> to vector<8x128xf32>
    %29 = arith.mulf %20, %28 : vector<8x128xf32>
    %30 = arith.mulf %21, %21 : vector<8x128xf32>
    %cst_22 = arith.constant dense<0.000000e+00> : vector<8xf32>
    %31 = vector.multi_reduction <add>, %30, %cst_22 [1] : vector<8x128xf32> to vector<8xf32>
    %32 = vector.shape_cast %31 : vector<8xf32> to vector<8x1xf32>
    %cst_23 = arith.constant 9.99999996E-13 : f32
    %33 = vector.broadcast %cst_23 : f32 to vector<8x1xf32>
    %34 = arith.maximumf %32, %33 : vector<8x1xf32>
    %35 = math.rsqrt %34 : vector<8x1xf32>
    %36 = vector.broadcast %35 : vector<8x1xf32> to vector<8x128xf32>
    %37 = arith.mulf %21, %36 : vector<8x128xf32>
    %cst_24 = arith.constant dense<0.000000e+00> : vector<8x8xf32>
    %38 = tpu.matmul %29, %37, %cst_24 {dimension_numbers = #tpu.dot_dimension_numbers<[1], [1], [0], [0], [0, 0, 1, 0], [], []>} : vector<8x128xf32>, vector<8x128xf32>, vector<8x8xf32> -> vector<8x8xf32>
    %39 = arith.mulf %29, %37 : vector<8x128xf32>
    %cst_25 = arith.constant dense<0.000000e+00> : vector<8xf32>
    %40 = vector.multi_reduction <add>, %39, %cst_25 [1] : vector<8x128xf32> to vector<8xf32>
    %41 = vector.shape_cast %40 : vector<8xf32> to vector<8x1xf32>
    %cst_26 = arith.constant 5.000000e+00 : f32
    %42 = vector.broadcast %cst_26 : f32 to vector<8x8xf32>
    %43 = arith.mulf %38, %42 : vector<8x8xf32>
    %44 = math.exp %43 : vector<8x8xf32>
    %cst_27 = arith.constant dense<0.000000e+00> : vector<8xf32>
    %45 = vector.multi_reduction <add>, %44, %cst_27 [1] : vector<8x8xf32> to vector<8xf32>
    %46 = vector.shape_cast %45 : vector<8xf32> to vector<8x1xf32>
    %cst_28 = arith.constant 5.000000e+00 : f32
    %47 = vector.broadcast %cst_28 : f32 to vector<8x1xf32>
    %48 = arith.mulf %41, %47 : vector<8x1xf32>
    %49 = math.exp %48 : vector<8x1xf32>
    %50 = arith.subf %46, %49 : vector<8x1xf32>
    %51 = math.log %50 : vector<8x1xf32>
    %cst_29 = arith.constant 5.000000e+00 : f32
    %52 = vector.broadcast %cst_29 : f32 to vector<8x1xf32>
    %53 = arith.mulf %41, %52 : vector<8x1xf32>
    %54 = arith.subf %51, %53 : vector<8x1xf32>
    %55 = vector.shape_cast %54 : vector<8x1xf32> to vector<1x8x1xf32>
    %cst_30 = arith.constant dense<0.000000e+00> : vector<1xf32>
    %56 = vector.multi_reduction <add>, %55, %cst_30 [1, 2] : vector<1x8x1xf32> to vector<1xf32>
    %57 = vector.shape_cast %56 : vector<1xf32> to vector<1x1x1xf32>
    %58 = vector.extract %57[0, 0, 0] : f32 from vector<1x1x1xf32>
    %cst_31 = arith.constant 8.000000e+00 : f32
    %59 = arith.divf %58, %cst_31 : f32
    %c0_32 = arith.constant 0 : index
    %c0_33 = arith.constant 0 : index
    %60 = memref.load %arg7[%c0_32, %c0_33] : memref<1x1xf32, #tpu.memory_space<smem>>
    memref.store %59, %arg7[%c0_32, %c0_33] : memref<1x1xf32, #tpu.memory_space<smem>>
    return
  }
}

</mosaic_0001>

<bundles_post_ra>
// kernel: tpu_custom_call.1
= control target key start
LH: loop header
LB: loop body
LE: loop exit
PB: predicated region body
PF: predicated region fallthrough
CT: control target
= control target key end

     0   :  { %13 = vsyncpa [#allocation4], 0  ;;  %s712_s0 = inlined_call_operand.hbm [shape: f32[8,32], index: 0, kind: input, shape index: {}]   ;;  %s713_s1 = inlined_call_operand.hbm [shape: f32[8,32], index: 1, kind: input, shape index: {}]   ;;  %s714_s2 = inlined_call_operand.hbm [shape: bf16[32,128], index: 2, kind: input, shape index: {}]   ;;  %s715_s3 = inlined_call_operand.vmem [shape: f32[1,128], index: 3, kind: input, shape index: {}]   ;;  %s716_s4 = inlined_call_operand.hbm [shape: bf16[128,128], index: 4, kind: input, shape index: {}]   ;;  %s717_s5 = inlined_call_operand.vmem [shape: f32[1,128], index: 5, kind: input, shape index: {}]   ;;  %s718_s6 = inlined_call_operand.hbm [shape: f32[16,128], index: 6, kind: output, shape index: {0}]   ;;  %s719_s7 = inlined_call_operand.hbm [shape: f32[1,1], index: 7, kind: output, shape index: {1}]  }
   0x1   :  { %14 = vsyncpa [#allocation8], 0 }
   0x2   :  { %15 = vsyncpa [#allocation11], 0 }
   0x3   :  { %16 = vsyncpa [#allocation5], 0 }
   0x4   :  { %17 = vsyncpa [#allocation6], 0  ;;  %s630_s24 = smov [#allocation7]   ;;  %s631_s26 = smov [#allocation3]  }
   0x5   :  { %s34_s25 = sshll.u32 %s630_s24, 4  ;;  %s24_s27 = sshll.u32 %s631_s26, 4  ;;  %s35_s25 = int_to_ptr.vmem [resolvable:$true] %s34_s25  ;;  %s25_s27 = int_to_ptr.vmem [resolvable:$true] %s24_s27 }
   0x6   :  { %s520_s28 = scalar_lea.vmem %s35_s25, 128  ;;  %p525_p1 = scmp.lt.s32.totalorder %s35_s25, %s35_s25 }
   0x7   :  { %p521_p0 = scmp.ne.s32.totalorder %s35_s25, %s520_s28  ;;  %p526_p2 = scmp.lt.s32.totalorder %s520_s28, %s520_s28 }
   0x9   :  { %p527_p3 = por %p526_p2, %p525_p1 }
   0xb   :  { %p528_p4 = pnand %p527_p3, %p521_p0 }
   0xd   :  { %531 = shalt.err (!%p528_p4)
}
   0xe   :  { %37 = dma.hbm_to_vmem [thread:$0]  %s713_s1, 128, %s35_s25, [#allocation8]  }
   0xf   :  { %s540_s8 = scalar_lea.vmem %s25_s27, 128  ;;  %p545_p6 = scmp.lt.s32.totalorder %s25_s27, %s25_s27 }
  0x10   :  { %p541_p5 = scmp.ne.s32.totalorder %s25_s27, %s540_s8  ;;  %p546_p7 = scmp.lt.s32.totalorder %s540_s8, %s540_s8 }
  0x12   :  { %p547_p8 = por %p546_p7, %p545_p6 }
  0x14   :  { %p548_p9 = pnand %p547_p8, %p541_p5 }
  0x16   :  { %551 = shalt.err (!%p548_p9)
}
  0x17   :  { %27 = dma.hbm_to_vmem [thread:$0]  %s712_s0, 128, %s25_s27, [#allocation4]  }
  0x18   :  { %s632_s11 = smov [#allocation9]  }
  0x19   :  { %s43_s12 = sshll.u32 %s632_s11, 4  ;;  %s44_s12 = int_to_ptr.vmem [resolvable:$true] %s43_s12 }
  0x1a   :  { %s560_s13 = scalar_lea.vmem %s44_s12, 256  ;;  %p565_p11 = scmp.lt.s32.totalorder %s44_s12, %s44_s12 }
  0x1b   :  { %p561_p10 = scmp.ne.s32.totalorder %s44_s12, %s560_s13  ;;  %p566_p12 = scmp.lt.s32.totalorder %s560_s13, %s560_s13 }
  0x1d   :  { %p567_p13 = por %p566_p12, %p565_p11 }
  0x1f   :  { %p568_p0 = pnand %p567_p13, %p561_p10 }
  0x21   :  { %571 = shalt.err (!%p568_p0)
}
  0x22   :  { %s633_s1 = smov 64   ;;  %s634_s14 = smov 4  }
  0x23   :  { %49 = dma.hbm_to_vmem [thread:$0]  %s714_s2, 256, %s44_s12, [#allocation8], %s633_s1, %s633_s1, %s634_s14  }
  0x24   :  { %s635_s17 = smov [#allocation10]  }
  0x25   :  { %s57_s18 = sshll.u32 %s635_s17, 4  ;;  %s58_s18 = int_to_ptr.vmem [resolvable:$true] %s57_s18 }
  0x26   :  { %s580_s0 = scalar_lea.vmem %s58_s18, 1024  ;;  %p585_p2 = scmp.lt.s32.totalorder %s58_s18, %s58_s18 }
  0x27   :  { %p581_p1 = scmp.ne.s32.totalorder %s58_s18, %s580_s0  ;;  %p586_p3 = scmp.lt.s32.totalorder %s580_s0, %s580_s0 }
  0x29   :  { %p587_p4 = por %p586_p3, %p585_p2 }
  0x2b   :  { %p588_p5 = pnand %p587_p4, %p581_p1 }
  0x2d   :  { %591 = shalt.err (!%p588_p5)
}
  0x2e   :  { %63 = dma.hbm_to_vmem [thread:$0]  %s716_s4, 1024, %s58_s18, [#allocation11], %s633_s1, %s633_s1, %s634_s14  }
  0x2f   :  { %620 = dma.done.wait [#allocation4], 128  }
  0x30   :  { %621 = vsyncadd [#allocation4], 4294967168 }
  0x31   :  { %622 = dma.done.wait [#allocation8], 384  }
  0x32   :  { %623 = vsyncadd [#allocation8], 4294966912 }
  0x33   :  { %624 = dma.done.wait [#allocation11], 1024  }
  0x34   :  { %625 = vsyncadd [#allocation11], 4294966272  ;;  %v636_v0 = vmov 0.0   ;;  %vm637_vm0 = vmmov 0   ;;  %v492_v1 = vld [vmem:[#allocation9 + $0x8] sm:$0xff]   ;;  %vm80_vm1 = vcmask 261120  }
  0x35   :  { %445 = vmatprep.subr.bf16.mxu0 %v636_v0  ;;  %449 = vmatprep.mubr.msk.bf16.mxu0 %vm637_vm0, %v636_v0  ;;  %v493_v2 = vld [vmem:[#allocation9] sm:$0xff]   ;;  %v79_v3 = vld [vmem:[#allocation3] sm:$0xff]  ;;  %v82_v4 = vld [vmem:[#allocation7] sm:$0xff]  ;;  %vm359_vm2 = vcmask 64512   ;;  %vm370_vm3 = vcmask 7168  }
  0x36   :  { %453 = vmatprep.subr.bf16.mxu1 %v636_v0  ;;  %469 = vmatprep.mubr.msk.bf16.mxu1 %vm637_vm0, %v636_v0  ;;  %81 = vst.msk [vmem:[#allocation2] sm:$0xff] %vm80_vm1, %v79_v3  ;;  %83 = vst.msk [vmem:[#allocation2 + $0x8] sm:$0xff] %vm80_vm1, %v82_v4  ;;  %v494_v5 = vld [vmem:[#allocation10 + $0x38] sm:$0xff]   ;;  %v495_v6 = vld [vmem:[#allocation10 + $0x30] sm:$0xff]  }
  0x37   :  { %446 = vmatpush3.bf16.msra.mxu0 %v492_v1  ;;  %454 = vmatpush3.bf16.msra.mxu1 %v494_v5  ;;  %v496_v7 = vld [vmem:[#allocation10 + $0x28] sm:$0xff]   ;;  %v497_v11 = vld [vmem:[#allocation10 + $0x20] sm:$0xff]   ;;  %v498_v12 = vld [vmem:[#allocation10 + $0x18] sm:$0xff]  }
  0x38   :  { %447 = vmatprep.subr.bf16.mxu0 %v636_v0  ;;  %455 = vmatprep.subr.bf16.mxu1 %v636_v0  ;;  %v499_v13 = vld [vmem:[#allocation10 + $0x10] sm:$0xff]   ;;  %v500_v14 = vld [vmem:[#allocation10 + $0x8] sm:$0xff]   ;;  %v501_v15 = vld [vmem:[#allocation10] sm:$0xff]  }
  0x39   :  { %v418_v16 = vld [vmem:[%s715_s3] ss:$0 sm:$0xff]  ;;  %s638_s3 = smov [#allocation12]  }
  0x3a   :  { %v422_v26 = vld [vmem:[%s717_s5] ss:$0 sm:$0xff]  ;;  %s391_s5 = sshll.u32 %s638_s3, 4  ;;  %s392_s5 = int_to_ptr.vmem [resolvable:$true] %s391_s5 }
  0x3b   :  { %448 = vmatpush3.bf16.msra.mxu0 %v493_v2  ;;  %456 = vmatpush3.bf16.msra.mxu1 %v495_v6  ;;  %s592_s23 = scalar_lea.vmem %s392_s5, 256  ;;  %p597_p7 = scmp.lt.s32.totalorder %s392_s5, %s392_s5 }
  0x3c   :  { %473 = vmatprep.subr.mxu0 %v636_v0  ;;  %457 = vmatprep.subr.bf16.mxu1 %v636_v0  ;;  %p593_p6 = scmp.ne.s32.totalorder %s392_s5, %s592_s23  ;;  %p598_p8 = scmp.lt.s32.totalorder %s592_s23, %s592_s23 }
  0x3d   :  { %v84_v8 = vld [vmem:[#allocation2] sm:$0xff]  ;;  %v85_v9 = vld [vmem:[#allocation2 + $0x8] sm:$0xff] }
  0x3e   :  { %v86_v10 = vpack.c.bf16 %v85_v9, %v84_v8  ;;  %p599_p9 = por %p598_p8, %p597_p7 }
  0x3f   :  { %458 = vmatpush3.bf16.msra.mxu1 %v496_v7 }
  0x40   :  { %450 = vmatmul.mubr.msk.bf16.vlgmr.msra.gmra.mxu0 %vm80_vm1, %v86_v10  ;;  %459 = vmatprep.subr.bf16.mxu1 %v636_v0  ;;  %p600_p10 = pnand %p599_p9, %p593_p6 }
  0x41   :  { %475 = vmatprep.mubr.msk.f32.mxu0 %vm637_vm0, %v636_v0 }
  0x43   :  { %460 = vmatpush3.bf16.msra.mxu1 %v497_v11 }
  0x44   :  { %461 = vmatprep.subr.bf16.mxu1 %v636_v0 }
  0x47   :  { %462 = vmatpush3.bf16.msra.mxu1 %v498_v12 }
  0x48   :  { %463 = vmatprep.subr.bf16.mxu1 %v636_v0 }
  0x4b   :  { %464 = vmatpush3.bf16.msra.mxu1 %v499_v13 }
  0x4c   :  { %465 = vmatprep.subr.bf16.mxu1 %v636_v0 }
  0x4f   :  { %466 = vmatpush3.bf16.msra.mxu1 %v500_v14 }
  0x50   :  { %467 = vmatprep.subr.bf16.mxu1 %v636_v0 }
  0x53   :  { %468 = vmatpush3.bf16.msra.mxu1 %v501_v15 }
 0x100   :  { %v147_v17 = vpop.f32.mrf.mxu0 }
 0x101   :  { %v148_v19 = vadd.f32 %v418_v16, %v147_v17 }
 0x102   :  { %v451_v18 = vpop.f32.mrf.mxu0 }
 0x103   :  { %v154_v23 = vmax.f32 %v148_v19, 0.0 }
 0x104   :  { %v150_v20 = vpop.f32.mrf.mxu0 }
 0x105   :  { %v151_v21 = vadd.f32 %v418_v16, %v150_v20 }
 0x106   :  { %v452_v22 = vpop.f32.mrf.mxu0 }
 0x107   :  { %v155_v24 = vmax.f32 %v151_v21, 0.0 }
 0x109   :  { %v156_v25 = vpack.c.bf16 %v155_v24, %v154_v23 }
 0x10b   :  { %470 = vmatmul.mubr.bf16.vlgmr.msra.gmra.mxu1 %v156_v25 }
 0x1cb   :  { %v262_v27 = vpop.f32.mrf.mxu1 }
 0x1cc   :  { %v263_v28 = vadd.f32 %v422_v26, %v262_v27 }
 0x1cd   :  { %v471_v29 = vpop.f32.mrf.mxu1 }
 0x1ce   :  { %269 = vst [vmem:[#allocation12] sm:$0xff] %v263_v28  ;;  %v271_v34 = vmul.f32 %v263_v28, %v263_v28 }
 0x1cf   :  { %v265_v30 = vpop.f32.mrf.mxu1 }
 0x1d0   :  { %v266_v31 = vadd.f32 %v422_v26, %v265_v30 }
 0x1d1   :  { %v472_v32 = vpop.f32.mrf.mxu1 }
 0x1d2   :  { %270 = vst [vmem:[#allocation12 + $0x8] sm:$0xff] %v266_v31  ;;  %v277_v33 = vmul.f32 %v266_v31, %v266_v31 }
 0x1d4   :  { %278 = vadd.xlane.f32.xlu0 %v277_v33 }
 0x1d8   :  { %272 = vadd.xlane.f32.xlu0 %v271_v34 }
 0x25d   :  { %v279_v35 = vpop.xlane.xlu0 %278 }
 0x25e   :  { %v280_v36 = vmax.f32 %v279_v35, 1e-12 }
 0x260   :  { %502 = vrsqrt.f32 %v280_v36 }
 0x261   :  { %v273_v37 = vpop.xlane.xlu0 %272 }
 0x262   :  { %v274_v38 = vmax.f32 %v273_v37, 1e-12 }
 0x264   :  { %504 = vrsqrt.f32 %v274_v38 }
 0x26d   :  { %v503_v39 = vpop.eup %502 }
 0x26e   :  { %v282_v40 = vmul.f32 %v503_v39, %v266_v31 }
 0x270   :  { %474 = vmatpush3.xpose.msra.mxu0 %v282_v40 }
 0x271   :  { %v505_v41 = vpop.eup %504 }
 0x272   :  { %v276_v42 = vmul.f32 %v505_v41, %v263_v28 }
 0x274   :  { %476 = vmatmul.mubr.f32.vlgmr.msra.gmra.mxu0 %v276_v42  ;;  %v353_v43 = vmul.f32 %v282_v40, %v276_v42 }
 0x276   :  { %354 = vadd.xlane.f32.xlu1 %v353_v43 }
 0x2ff   :  { %v355_v50 = vpop.xlane.xlu1 %354 }
 0x300   :  { %v363_v51 = vmul.f32 5.0, %v355_v50 }
 0x302   :  { %v364_v52 = vmul.f32 1.442695, %v363_v51 }
 0x334   :  { %v349_v44 = vpop.f32.mrf.mxu0 }
 0x335   :  { %v356_v45 = vmul.f32 5.0, %v349_v44 }
 0x336   :  { %v477_v46 = vpop.f32.mrf.mxu0 }
 0x337   :  { %v357_v47 = vmul.f32 1.442695, %v356_v45 }
 0x339   :  { %506 = vpow2.f32 %v357_v47 }
 0x33a   :  { %508 = vpow2.f32 %v364_v52 }
 0x346   :  { %v507_v48 = vpop.eup %506 }
 0x347   :  { %v360_v49 = vsel %vm359_vm2, %v507_v48, 0.0  ;;  %v509_v53 = vpop.eup %508 }
 0x348   :  { %361 = vadd.xlane.f32.xlu1 %v360_v49 }
 0x3d1   :  { %v362_v54 = vpop.xlane.xlu1 %361 }
 0x3d2   :  { %v366_v55 = vsub.f32 %v362_v54, %v509_v53 }
 0x3d4   :  { %510 = vlog2.f32 %v366_v55 }
 0x3e1   :  { %v511_v56 = vpop.eup %510 }
 0x3e2   :  { %v368_v57 = vmul.f32 0.6931472, %v511_v56 }
 0x3e4   :  { %v369_v58 = vsub.f32 %v368_v57, %v363_v51 }
 0x3e6   :  { %v371_v59 = vsel %vm370_vm3, %v369_v58, 0.0 }
 0x3e7   :  { %372 = vadd.xlane.f32.xlu0 %v371_v59 }
 0x3e8   :  { %603 = shalt.err (!%p600_p10)
}
 0x3e9   :  { %s639_s24 = smov 128   ;;  %s640_s25 = smov 8  }
 0x3ea   :  { %397 = dma.vmem_to_hbm [thread:$0]  %s392_s5, 256, %s718_s6, [#allocation5], %s639_s24, %s639_s24, %s640_s25  }
 0x3eb   :  { %s641_s30 = smov [#allocation13]  }
 0x470   :  { %v373_v60 = vpop.xlane.xlu0 %372 }
 0x471   :  { %v374_v61 = vrot.slane %v373_v60, 4 }
 0x473   :  { %v375_v62 = vadd.f32 %v374_v61, %v373_v60 }
 0x475   :  { %v376_v63 = vrot.slane %v375_v62, 2 }
 0x477   :  { %v377_v0 = vadd.f32 %v376_v63, %v375_v62 }
 0x479   :  { %v378_v1 = vrot.slane %v377_v0, 1 }
 0x47b   :  { %v379_v2 = vadd.f32 %v378_v1, %v377_v0 }
 0x47d   :  { %478 = vpush %v379_v2 }
 0x4ae   :  { %s479_s28 = spop %478 }
 0x4af   :  { %s383_s29 = smul.f32 0.125, %s479_s28 }
 0x4b1   :  { %385 = sst [smem:[#allocation13]] %s383_s29 }
 0x4b2   :  { %405 = dma.smem_to_hbm %s641_s30, 16, %s719_s7, [#allocation6]  }
 0x4b3   :  { %626 = dma.done.wait [#allocation5], 256  }
 0x4b4   :  { %627 = vsyncadd [#allocation5], 4294967040 }
 0x4b5   :  { %628 = dma.done.wait [#allocation6], 16  }
 0x4b6   :  { %629 = vsyncadd [#allocation6], 4294967280 }
 0x4b7   :  { %412 = sfence }
 0x4b8   :  { %413 = vsyncpa [#allocation4], 1 }
 0x4b9   :  { %414 = vsyncpa [#allocation8], 1 }
 0x4ba   :  { %415 = vsyncpa [#allocation11], 1 }
 0x4bb   :  { %416 = vsyncpa [#allocation5], 1 }
 0x4bc   :  { %417 = vsyncpa [#allocation6], 1 }

</bundles_post_ra>
